<compile_context>
chip_gen: v6e
topology: v6e:2x2x1
jax: 0.10.0
libtpu: 0.0.40
codegen_flags: <defaults>
</compile_context>

<pallas_src>
import functools

import jax
import jax.numpy as jnp
from jax import lax
from jax.experimental import pallas as pl
from jax.experimental.pallas import tpu as pltpu


def _rmsnorm_kernel(eps, inv_h, x_ref, w_ref, o_ref):
    # x_ref: (TILE_ROWS, H) VMEM block ; w_ref: (1, H) resident ; o_ref: (TILE_ROWS, H)
    x = x_ref[...]
    input_dtype = x.dtype
    x32 = x.astype(jnp.float32)
    # variance = mean(x^2) over hidden: cross-lane sum (XLU) * const 1/H (no divide)
    var = jnp.sum(x32 * x32, axis=-1, keepdims=True) * inv_h
    y = x32 * lax.rsqrt(var + eps)  # rsqrt -> EUP slot (free alongside VPU/DMA)
    # torch order: weight * hidden.to(input_dtype)  (promotion follows weight dtype)
    out = w_ref[...] * y.astype(input_dtype)
    o_ref[...] = out.astype(o_ref.dtype)


def _vmem_budgets():
    """Return (block_budget_bytes, vmem_limit_bytes) sized per TPU generation."""
    cap = None
    try:
        info = pltpu.get_tpu_info()
        cap = int(getattr(info, "vmem_capacity_bytes", 0)) or None
    except Exception:
        cap = None
    if cap is not None and cap >= 96 * 1024 * 1024:
        # v5e / v6e class: 128 MiB VMEM per TensorCore.
        return 48 * 1024 * 1024, 96 * 1024 * 1024
    # v7x class (64 MiB physical per TC) or unknown: stay comfortably under 64 MiB.
    return 36 * 1024 * 1024, 54 * 1024 * 1024


def phi3_fast_rmsnorm(hidden_states, weight, eps=1e-6, block_budget_bytes=None):
    """RMSNorm over the last axis of hidden_states [..., H] (exact torch semantics)."""
    orig_shape = hidden_states.shape
    H = orig_shape[-1]
    assert weight.shape == (H,)

    # Flatten all leading dims into a single row axis.
    R = 1
    for d in orig_shape[:-1]:
        R *= d
    x2d = hidden_states.reshape(R, H)
    w2d = weight.reshape(1, H)

    in_dtype = hidden_states.dtype
    # torch promotion of (weight * x.to(input_dtype)).
    out_dtype = jnp.promote_types(in_dtype, weight.dtype)

    in_bytes = jnp.dtype(in_dtype).itemsize
    out_bytes = jnp.dtype(out_dtype).itemsize

    # Sublane alignment: 8 rows for 32-bit, 16 rows if any 16-bit dtype is
    # involved (packed sublanes), so blocks lower without relayout.
    row_align = 16 if min(in_bytes, out_bytes) < 4 else 8

    auto_budget, vmem_limit_bytes = _vmem_budgets()
    if block_budget_bytes is None:
        block_budget_bytes = auto_budget

    # Biggest row tile whose double-buffered (in + out) blocks fit the budget.
    # No artificial row cap: small-H configs still get multi-MiB blocks.
    bytes_per_row = H * (in_bytes + out_bytes)
    tile_rows = (block_budget_bytes // (2 * bytes_per_row)) // row_align * row_align
    tile_rows = max(row_align, tile_rows)

    if tile_rows >= R:
        # Single block covering the whole problem: a full-extent block is
        # always legal, even when R is not sublane-aligned.
        tile_rows = R

    # Ragged grid: no jnp.pad / output slice (those cost extra HBM passes).
    # Rows are independent, so garbage reads in the partial final block are
    # harmless and its out-of-bounds writes are dropped by Pallas.
    grid = (pl.cdiv(R, tile_rows),)

    kernel = functools.partial(_rmsnorm_kernel, float(eps), float(1.0 / H))

    # NOTE: H = 3072 for Phi-3 is a multiple of 128, so stores stay lane-dense
    # and unmasked; an H that is not a 128-multiple would fall back to masked
    # stores (correct, just slower on v5e's single vst slot).
    out2d = pl.pallas_call(
        kernel,
        out_shape=jax.ShapeDtypeStruct((R, H), out_dtype),
        grid_spec=pltpu.PrefetchScalarGridSpec(
            num_scalar_prefetch=0,
            grid=grid,
            in_specs=[
                # Row-tiled input; H axis never tiled (the mean needs full H).
                pl.BlockSpec((tile_rows, H), lambda i: (i, 0)),
                # Weight: constant block index -> stays VMEM-resident.
                pl.BlockSpec((1, H), lambda i: (0, 0)),
            ],
            out_specs=pl.BlockSpec((tile_rows, H), lambda i: (i, 0)),
        ),
        compiler_params=pltpu.CompilerParams(
            # Single row axis marked parallel so it can shard across both
            # TensorCores on v7x (single-TC on v5e/v6e; no effect there).
            dimension_semantics=("parallel",),
            vmem_limit_bytes=vmem_limit_bytes,
        ),
    )(x2d, w2d)

    return out2d.reshape(orig_shape)


if __name__ == "__main__":
    # Small shapes consistent with the module's math path: [batch, seq, hidden], seq < 128.
    B, S, H = 2, 8, 128
    eps = 1e-6

    key = jax.random.PRNGKey(0)
    x = jax.random.normal(key, (B, S, H), dtype=jnp.float32)
    # Deterministic parameter init: nn.Parameter(torch.ones(hidden_size))
    weight = jnp.ones((H,), dtype=jnp.float32)

    out = jax.block_until_ready(phi3_fast_rmsnorm(x, weight, eps=eps))

    # Reference check against plain-JAX math (same formula as the torch module)
    x32 = x.astype(jnp.float32)
    var = jnp.mean(x32 * x32, axis=-1, keepdims=True)
    ref = weight * (x32 * lax.rsqrt(var + eps)).astype(x.dtype)
    assert out.shape == ref.shape and out.dtype == ref.dtype
    assert jnp.allclose(out, ref, atol=1e-5, rtol=1e-5), "f32 mismatch vs reference"

    # bf16 input / f32 weight (mixed-precision promotion path) with a row count
    # that is not sublane-aligned (exercises the full-extent-block path).
    xb = jax.random.normal(jax.random.PRNGKey(1), (3, 5, H), dtype=jnp.bfloat16)
    outb = jax.block_until_ready(phi3_fast_rmsnorm(xb, weight, eps=eps))
    xb32 = xb.astype(jnp.float32)
    varb = jnp.mean(xb32 * xb32, axis=-1, keepdims=True)
    refb = weight * (xb32 * lax.rsqrt(varb + eps)).astype(xb.dtype)
    assert outb.dtype == refb.dtype
    assert jnp.allclose(outb.astype(jnp.float32), refb.astype(jnp.float32),
                        atol=2e-2, rtol=2e-2), "bf16 mismatch vs reference"

    # Multi-step ragged grid (no pad / no slice): force small row tiles so the
    # last block is partial (100 rows with 32-row tiles -> 4 grid steps).
    xr = jax.random.normal(jax.random.PRNGKey(2), (1, 100, H), dtype=jnp.float32)
    outr = jax.block_until_ready(
        phi3_fast_rmsnorm(xr, weight, eps=eps, block_budget_bytes=64 * 1024))
    xr32 = xr.astype(jnp.float32)
    varr = jnp.mean(xr32 * xr32, axis=-1, keepdims=True)
    refr = weight * (xr32 * lax.rsqrt(varr + eps)).astype(xr.dtype)
    assert jnp.allclose(outr, refr, atol=1e-5, rtol=1e-5), "ragged-grid mismatch"

    print("KERNEL_OK")
</pallas_src>

<mosaic_0001>
module attributes {stable_mosaic.version = 11 : i64} {
  func.func @_rmsnorm_kernel(%arg0: i32, %arg1: memref<16x128xf32, #tpu.memory_space<vmem>>, %arg2: memref<1x128xf32, #tpu.memory_space<vmem>>, %arg3: memref<16x128xf32, #tpu.memory_space<vmem>>) attributes {dimension_semantics = [#tpu.dimension_semantics<parallel>], iteration_bounds = array<i64: 1>, scalar_prefetch = 0 : i64, scratch_operands = 0 : i64, tpu.core_type = #tpu.core_type<tc>, window_params = [{transform_indices = @transform_0, window_bounds = array<i64: 16, 128>}, {pipeline_mode = #tpu.pipeline_mode<synchronous>, transform_indices = @transform_1, window_bounds = array<i64: 1, 128>}, {transform_indices = @transform_2, window_bounds = array<i64: 16, 128>}]} {
    %c0 = arith.constant 0 : index
    %c0_0 = arith.constant 0 : index
    %0 = vector.load %arg1[%c0, %c0_0] : memref<16x128xf32, #tpu.memory_space<vmem>>, vector<16x128xf32>
    %1 = arith.mulf %0, %0 : vector<16x128xf32>
    %cst = arith.constant dense<0.000000e+00> : vector<16xf32>
    %2 = vector.multi_reduction <add>, %1, %cst [1] : vector<16x128xf32> to vector<16xf32>
    %3 = vector.shape_cast %2 : vector<16xf32> to vector<16x1xf32>
    %cst_1 = arith.constant 7.812500e-03 : f32
    %4 = vector.broadcast %cst_1 : f32 to vector<16x1xf32>
    %5 = arith.mulf %3, %4 : vector<16x1xf32>
    %cst_2 = arith.constant 9.99999997E-7 : f32
    %6 = vector.broadcast %cst_2 : f32 to vector<16x1xf32>
    %7 = arith.addf %5, %6 : vector<16x1xf32>
    %8 = math.rsqrt %7 : vector<16x1xf32>
    %9 = vector.broadcast %8 : vector<16x1xf32> to vector<16x128xf32>
    %10 = arith.mulf %0, %9 : vector<16x128xf32>
    %c0_3 = arith.constant 0 : index
    %c0_4 = arith.constant 0 : index
    %11 = vector.load %arg2[%c0_3, %c0_4] : memref<1x128xf32, #tpu.memory_space<vmem>>, vector<1x128xf32>
    %12 = vector.broadcast %11 : vector<1x128xf32> to vector<16x128xf32>
    %13 = arith.mulf %12, %10 : vector<16x128xf32>
    %c0_5 = arith.constant 0 : index
    %c0_6 = arith.constant 0 : index
    %14 = vector.load %arg3[%c0_5, %c0_6] : memref<16x128xf32, #tpu.memory_space<vmem>>, vector<16x128xf32>
    tpu.vector_store %arg3[%c0_5, %c0_6], %13 {strides = array<i32>} : memref<16x128xf32, #tpu.memory_space<vmem>>, vector<16x128xf32>,
    return
  }
  func.func @transform_0(%arg0: i32) -> (i32, i32) {
    %c0_i32 = arith.constant 0 : i32
    %c0_i32_0 = arith.constant 0 : i32
    return %arg0, %c0_i32 : i32, i32
  }
  func.func @transform_1(%arg0: i32) -> (i32, i32) {
    %c0_i32 = arith.constant 0 : i32
    %c0_i32_0 = arith.constant 0 : i32
    %c0_i32_1 = arith.constant 0 : i32
    return %c0_i32, %c0_i32_0 : i32, i32
  }
  func.func @transform_2(%arg0: i32) -> (i32, i32) {
    %c0_i32 = arith.constant 0 : i32
    %c0_i32_0 = arith.constant 0 : i32
    return %arg0, %c0_i32 : i32, i32
  }
}

</mosaic_0001>

<bundles_post_ra>
// kernel: tpu_custom_call.1
= control target key start
LH: loop header
LB: loop body
LE: loop exit
PB: predicated region body
PF: predicated region fallthrough
CT: control target
= control target key end

     0   :  { %7 = vsyncpa [#allocation3], 0  ;;  %s157_s0 = inlined_call_operand.hbm [shape: f32[16,128], index: 0, kind: input, shape index: {}]   ;;  %s158_s1 = inlined_call_operand.vmem [shape: f32[1,128], index: 1, kind: input, shape index: {}]   ;;  %s159_s2 = inlined_call_operand.hbm [shape: f32[16,128], index: 2, kind: output, shape index: {}]  }
   0x1   :  { %8 = vsyncpa [#allocation4], 0  ;;  %s123_s9 = smov [#allocation2]  }
   0x2   :  { %s14_s10 = sshll.u32 %s123_s9, 4  ;;  %s15_s10 = int_to_ptr.vmem [resolvable:$true] %s14_s10 }
   0x3   :  { %s87_s11 = scalar_lea.vmem %s15_s10, 256  ;;  %p92_p1 = scmp.lt.s32.totalorder %s15_s10, %s15_s10 }
   0x4   :  { %p88_p0 = scmp.ne.s32.totalorder %s15_s10, %s87_s11  ;;  %p93_p2 = scmp.lt.s32.totalorder %s87_s11, %s87_s11 }
   0x6   :  { %p94_p3 = por %p93_p2, %p92_p1 }
   0x8   :  { %p95_p4 = pnand %p94_p3, %p88_p0 }
   0xa   :  { %98 = shalt.err (!%p95_p4)
}
   0xb   :  { %s124_s12 = smov 128   ;;  %s125_s13 = smov 8  }
   0xc   :  { %20 = dma.hbm_to_vmem [thread:$0]  %s157_s0, 256, %s15_s10, [#allocation3], %s124_s12, %s124_s12, %s125_s13  }
   0xd   :  { %119 = dma.done.wait [#allocation3], 256  }
   0xe   :  { %120 = vsyncadd [#allocation3], 4294967040  ;;  %v26_v0 = vld [vmem:[#allocation2] sm:$0xff]  ;;  %v27_v1 = vld [vmem:[#allocation2 + $0x8] sm:$0xff]  ;;  %s126_s0 = smov [#allocation5]  }
   0xf   :  { %v28_v2 = vmul.f32 %v26_v0, %v26_v0  ;;  %v29_v3 = vmul.f32 %v27_v1, %v27_v1  ;;  %v70_v11 = vld [vmem:[%s158_s1] ss:$0 sm:$0xff]  ;;  %s58_s18 = sshll.u32 %s126_s0, 4  ;;  %s59_s18 = int_to_ptr.vmem [resolvable:$true] %s58_s18 }
  0x10   :  { %s99_s19 = scalar_lea.vmem %s59_s18, 256  ;;  %p104_p6 = scmp.lt.s32.totalorder %s59_s18, %s59_s18 }
  0x11   :  { %30 = vadd.xlane.f32.xlu0 %v28_v2  ;;  %p100_p5 = scmp.ne.s32.totalorder %s59_s18, %s99_s19  ;;  %p105_p7 = scmp.lt.s32.totalorder %s99_s19, %s99_s19 }
  0x13   :  { %p106_p8 = por %p105_p7, %p104_p6 }
  0x15   :  { %32 = vadd.xlane.f32.xlu0 %v29_v3  ;;  %p107_p9 = pnand %p106_p8, %p100_p5 }
  0x9a   :  { %v31_v4 = vpop.xlane.xlu0 %30 }
  0x9b   :  { %v34_v5 = vmul.f32 0.0078125, %v31_v4 }
  0x9d   :  { %v36_v6 = vadd.f32 1e-06, %v34_v5 }
  0x9e   :  { %v33_v7 = vpop.xlane.xlu0 %32 }
  0x9f   :  { %75 = vrsqrt.f32 %v36_v6  ;;  %v35_v8 = vmul.f32 0.0078125, %v33_v7 }
  0xa1   :  { %v37_v9 = vadd.f32 1e-06, %v35_v8 }
  0xa3   :  { %77 = vrsqrt.f32 %v37_v9 }
  0xac   :  { %v76_v10 = vpop.eup %75 }
  0xad   :  { %v40_v12 = vmul.f32 %v76_v10, %v26_v0 }
  0xaf   :  { %v49_v13 = vmul.f32 %v70_v11, %v40_v12 }
  0xb0   :  { %v78_v14 = vpop.eup %77 }
  0xb1   :  { %v41_v15 = vmul.f32 %v78_v14, %v27_v1  ;;  %51 = vst [vmem:[#allocation5] sm:$0xff] %v49_v13 }
  0xb3   :  { %v50_v16 = vmul.f32 %v70_v11, %v41_v15 }
  0xb5   :  { %52 = vst [vmem:[#allocation5 + $0x8] sm:$0xff] %v50_v16 }
  0xb6   :  { %110 = shalt.err (!%p107_p9)
}
  0xb7   :  { %64 = dma.vmem_to_hbm [thread:$0]  %s59_s18, 256, %s159_s2, [#allocation4], %s124_s12, %s124_s12, %s125_s13  }
  0xb8   :  { %121 = dma.done.wait [#allocation4], 256  }
  0xb9   :  { %122 = vsyncadd [#allocation4], 4294967040 }
  0xba   :  { %68 = vsyncpa [#allocation3], 1 }
  0xbb   :  { %69 = vsyncpa [#allocation4], 1 }

</bundles_post_ra>
